<compile_context>
chip_gen: v7x
topology: tpu7x:2x2x1
jax: 0.10.0
libtpu: 0.0.40
codegen_flags: <defaults>
</compile_context>

<pallas_src>
import functools
import math

import jax
import jax.numpy as jnp
from jax.experimental import pallas as pl
from jax.experimental.pallas import tpu as pltpu


# ----------------------------------------------------------------------------
# Single fused kernel: the entire composed 4-layer network, whole batch.
# All matmuls accumulate in f32 on the MXU; sigmoids run on the EUP slot.
# ----------------------------------------------------------------------------
def _fused_net_kernel(x_ref, w12_ref, b12_ref, w34_ref, b34_ref,
                      w56_ref, b56_ref, w78_ref, b78_ref, o_ref,
                      *, N, T2, Wo2, Ho3, Wo3):
    # x_ref  : (N*T2, 4*Cin) lane-folded input pixels: row = (n, i, j) of the
    #          L2 output grid, lanes = [tap(di,dj), cin] with t = di*2+dj.
    # w12_ref: (4*Cin, 128)  block-diagonal composed conv1∘conv2 (per tap).
    # b12_ref: (1, 128)      composed conv1∘conv2 bias tiled over the 4 taps.
    # w34_ref: (128, 32)     composed conv3∘conv4, taps stacked along K.
    # w56_ref: (9, 32, 64)   composed conv5∘conv6, one (32,64) block per tap.
    # w78_ref: (64, 1)       composed conv7∘conv8.
    # o_ref  : (N, Ho3*Wo3)
    P3 = Ho3 * Wo3

    # ---- L1 (= conv1∘conv2, 1x1 s2) + sigmoid and
    # ---- L2 (= conv3∘conv4, 2x2 s2) + sigmoid: exactly two matmuls ----------
    x = x_ref[...]                                            # (N*T2, 12)
    a1 = jax.nn.sigmoid(
        jnp.dot(x, w12_ref[...], preferred_element_type=jnp.float32)
        + b12_ref[...])                                       # (N*T2, 128)
    a2 = jax.nn.sigmoid(
        jnp.dot(a1, w34_ref[...], preferred_element_type=jnp.float32)
        + b34_ref[...])                                       # (N*T2, 32)

    # ---- L3 (= conv5∘conv6, 3x3 s2) + sigmoid: tap-batched, 9 matmuls ------
    # TODO(synk): for large Ho3*Wo3 replace the static per-tap row gather with
    # an im2col / strided patch build; at N*P3 = 2 it is just two row slices.
    acc3 = jnp.zeros((N * P3, w56_ref.shape[2]), jnp.float32)
    for di in range(3):
        for dj in range(3):
            rows = []
            for n in range(N):
                for i3 in range(Ho3):
                    for j3 in range(Wo3):
                        r = n * T2 + (2 * i3 + di) * Wo2 + (2 * j3 + dj)
                        rows.append(a2[r:r + 1, :])
            tap = rows[0] if len(rows) == 1 else jnp.concatenate(rows, axis=0)
            acc3 = acc3 + jnp.dot(tap, w56_ref[di * 3 + dj],
                                  preferred_element_type=jnp.float32)
    a3 = jax.nn.sigmoid(acc3 + b56_ref[...])                  # (N*P3, 64)

    # ---- L4 (= conv7∘conv8, 1x1) + sigmoid ---------------------------------
    out = jax.nn.sigmoid(
        jnp.dot(a3, w78_ref[...], preferred_element_type=jnp.float32)
        + b78_ref[...])                                       # (N*P3, 1)
    o_ref[...] = out.reshape(o_ref.shape).astype(o_ref.dtype)


def _fused_forward_pallas(x_fold, fused, *, N, T2, Wo2, Ho3, Wo3):
    P3 = Ho3 * Wo3
    kernel = functools.partial(_fused_net_kernel,
                               N=N, T2=T2, Wo2=Wo2, Ho3=Ho3, Wo3=Wo3)
    in_specs = [
        pl.BlockSpec(x_fold.shape, lambda i: (0, 0)),
        pl.BlockSpec(fused["w12"].shape, lambda i: (0, 0)),
        pl.BlockSpec(fused["b12"].shape, lambda i: (0, 0)),
        pl.BlockSpec(fused["w34"].shape, lambda i: (0, 0)),
        pl.BlockSpec(fused["b34"].shape, lambda i: (0, 0)),
        pl.BlockSpec(fused["w56"].shape, lambda i: (0, 0, 0)),
        pl.BlockSpec(fused["b56"].shape, lambda i: (0, 0)),
        pl.BlockSpec(fused["w78"].shape, lambda i: (0, 0)),
        pl.BlockSpec(fused["b78"].shape, lambda i: (0, 0)),
    ]
    return pl.pallas_call(
        kernel,
        out_shape=jax.ShapeDtypeStruct((N, P3), jnp.float32),
        grid=(1,),                                  # single step: whole batch
        in_specs=in_specs,
        out_specs=pl.BlockSpec((N, P3), lambda i: (0, 0)),
        compiler_params=pltpu.CompilerParams(
            dimension_semantics=("arbitrary",)),
    )(x_fold, fused["w12"], fused["b12"], fused["w34"], fused["b34"],
      fused["w56"], fused["b56"], fused["w78"], fused["b78"])


# ----------------------------------------------------------------------------
# Offline algebraic composition of the 4 linear pairs (exact; done once).
# ----------------------------------------------------------------------------
def build_fused_params(params):
    P = jax.lax.Precision.HIGHEST

    def mat1x1(w):                      # (Cout, Cin, 1, 1) -> (Cin, Cout)
        return jnp.transpose(w[:, :, 0, 0])

    def taps(w):                        # (Cout, Cin, kh, kw) -> (kh*kw, Cin, Cout)
        kh, kw = w.shape[2], w.shape[3]
        return jnp.stack([jnp.transpose(w[:, :, di, dj])
                          for di in range(kh) for dj in range(kw)], axis=0)

    (w1, b1), (w2, b2) = params["conv1"], params["conv2"]
    (w3, b3), (w4, b4) = params["conv3"], params["conv4"]
    (w5, b5), (w6, b6) = params["conv5"], params["conv6"]
    (w7, b7), (w8, b8) = params["conv7"], params["conv8"]

    # L1 = conv1∘conv2 (1x1, s2): block-diagonal over the 4 taps of layer 2.
    W1, W2 = mat1x1(w1), mat1x1(w2)
    w12 = jnp.matmul(W1, W2, precision=P)                               # (3, 32)
    b12 = jnp.matmul(b1[None, :], W2, precision=P) + b2[None, :]        # (1, 32)
    w12_bd = jnp.kron(jnp.eye(4, dtype=w12.dtype), w12)                 # (12, 128)
    b12_t = jnp.tile(b12, (1, 4))                                       # (1, 128)

    # L2 = conv3∘conv4 (2x2, s2): taps stacked along the K dimension.
    W3, W4t = mat1x1(w3), taps(w4)                                      # (32,4), (4,4,32)
    w34 = jnp.einsum("ck,tkd->tcd", W3, W4t, precision=P)               # (4, 32, 32)
    w34_s = w34.reshape(4 * 32, 32)                                     # (128, 32)
    b34 = jnp.matmul(b3[None, :], jnp.sum(W4t, axis=0), precision=P) + b4[None, :]

    # L3 = conv5∘conv6 (3x3, s2): keep as a per-tap stack (used tap-batched).
    W5, W6t = mat1x1(w5), taps(w6)                                      # (32,8), (9,8,64)
    w56 = jnp.einsum("ck,tkd->tcd", W5, W6t, precision=P)               # (9, 32, 64)
    b56 = jnp.matmul(b5[None, :], jnp.sum(W6t, axis=0), precision=P) + b6[None, :]

    # L4 = conv7∘conv8 (1x1).
    W7, W8 = mat1x1(w7), mat1x1(w8)
    w78 = jnp.matmul(W7, W8, precision=P)                               # (64, 1)
    b78 = jnp.matmul(b7[None, :], W8, precision=P) + b8[None, :]        # (1, 1)

    return dict(w12=w12_bd, b12=b12_t, w34=w34_s, b34=b34,
                w56=w56, b56=b56, w78=w78, b78=b78)


# ----------------------------------------------------------------------------
# Forward pass (mirrors Model.forward exactly).
# ----------------------------------------------------------------------------
@jax.jit
def model_forward(x_nchw, fused):
    x = jnp.transpose(x_nchw, (0, 2, 3, 1)).astype(jnp.float32)   # NCHW -> NHWC
    N, H, W, Cin = x.shape

    # Valid-padding output geometry of the composed layers.
    Ho1, Wo1 = (H - 1) // 2 + 1, (W - 1) // 2 + 1        # 1x1 stride-2
    Ho2, Wo2 = (Ho1 - 2) // 2 + 1, (Wo1 - 2) // 2 + 1    # 2x2 stride-2
    Ho3, Wo3 = (Ho2 - 3) // 2 + 1, (Wo2 - 3) // 2 + 1    # 3x3 stride-2
    if Ho3 < 1 or Wo3 < 1:
        raise ValueError(f"input spatial size {H}x{W} too small for this model")
    T2 = Ho2 * Wo2

    # Single fused gather: L2-tap (di,dj) at output (i,j) reads input pixel
    # (4i+2di, 4j+2dj); lanes ordered [tap=di*2+dj, cin] -> (N*T2, 4*Cin).
    xs = x[:, ::2, ::2, :][:, :2 * Ho2, :2 * Wo2, :]      # (N, 2*Ho2, 2*Wo2, Cin)
    xs = xs.reshape(N, Ho2, 2, Wo2, 2, Cin)
    xs = jnp.transpose(xs, (0, 1, 3, 2, 4, 5))            # (N, Ho2, Wo2, 2, 2, Cin)
    x_fold = xs.reshape(N * T2, 4 * Cin)

    out = _fused_forward_pallas(x_fold, fused, N=N, T2=T2,
                                Wo2=Wo2, Ho3=Ho3, Wo3=Wo3)   # (N, Ho3*Wo3)
    return out.reshape(N, 1, Ho3, Wo3)                       # NCHW (C=1)


# ----------------------------------------------------------------------------
# Parameters (deterministic, PyTorch-default-like uniform(-1/sqrt(fan_in))).
# ----------------------------------------------------------------------------
_CONV_CFG = [
    ("conv1", 3, 16, 1), ("conv2", 16, 32, 1), ("conv3", 32, 4, 1),
    ("conv4", 4, 32, 2), ("conv5", 32, 8, 1), ("conv6", 8, 64, 3),
    ("conv7", 64, 8, 1), ("conv8", 8, 1, 1),
]


def init_params(key):
    params = {}
    for name, cin, cout, k in _CONV_CFG:
        key, kw_, kb_ = jax.random.split(key, 3)
        bound = 1.0 / math.sqrt(cin * k * k)
        w = jax.random.uniform(kw_, (cout, cin, k, k), jnp.float32, -bound, bound)
        b = jax.random.uniform(kb_, (cout,), jnp.float32, -bound, bound)
        params[name] = (w, b)
    return params


# ----------------------------------------------------------------------------
# Pure-JAX reference (uncomposed, layer-by-layer) for the correctness check.
# ----------------------------------------------------------------------------
def reference_forward(x_nchw, params):
    def conv(x, wb, stride, act=False):
        w, b = wb
        y = jax.lax.conv_general_dilated(
            x, w, window_strides=(stride, stride), padding="VALID",
            dimension_numbers=("NCHW", "OIHW", "NCHW"),
            precision=jax.lax.Precision.HIGHEST)
        y = y + b.reshape(1, -1, 1, 1)
        return jax.nn.sigmoid(y) if act else y

    x = conv(x_nchw, params["conv1"], 1)
    x = conv(x, params["conv2"], 2, act=True)
    x = conv(x, params["conv3"], 1)
    x = conv(x, params["conv4"], 2, act=True)
    x = conv(x, params["conv5"], 1)
    x = conv(x, params["conv6"], 2, act=True)
    x = conv(x, params["conv7"], 1)
    x = conv(x, params["conv8"], 1, act=True)
    return x


if __name__ == "__main__":
    key = jax.random.PRNGKey(0)
    key, xkey = jax.random.split(key)
    # Small but valid spatial size (conv4 k2/s2 and conv6 k3/s2 both fit);
    # the original script's 2x3 spatial input would not survive the conv chain.
    x = jax.random.normal(xkey, (2, 3, 16, 16), jnp.float32)
    params = init_params(key)
    fused = build_fused_params(params)

    out = model_forward(x, fused)
    jax.block_until_ready(out)
    assert out.shape == (2, 1, 1, 1), out.shape

    ref = reference_forward(x, params)
    err = float(jnp.max(jnp.abs(out - ref)))
    assert err < 5e-3, f"mismatch vs reference: max abs err = {err}"

    print("KERNEL_OK")
</pallas_src>

<mosaic_0001>
module attributes {stable_mosaic.version = 11 : i64} {
  func.func @_fused_net_kernel(%arg0: i32, %arg1: memref<32x12xf32, #tpu.memory_space<vmem>>, %arg2: memref<12x128xf32, #tpu.memory_space<vmem>>, %arg3: memref<1x128xf32, #tpu.memory_space<vmem>>, %arg4: memref<128x32xf32, #tpu.memory_space<vmem>>, %arg5: memref<1x32xf32, #tpu.memory_space<vmem>>, %arg6: memref<9x32x64xf32, #tpu.memory_space<vmem>>, %arg7: memref<1x64xf32, #tpu.memory_space<vmem>>, %arg8: memref<64x1xf32, #tpu.memory_space<vmem>>, %arg9: memref<1x1xf32, #tpu.memory_space<vmem>>, %arg10: memref<2x1xf32, #tpu.memory_space<vmem>>) attributes {dimension_semantics = [#tpu.dimension_semantics<arbitrary>], iteration_bounds = array<i64: 1>, scalar_prefetch = 0 : i64, scratch_operands = 0 : i64, tpu.core_type = #tpu.core_type<tc>, window_params = [{pipeline_mode = #tpu.pipeline_mode<synchronous>, transform_indices = @transform_0, window_bounds = array<i64: 32, 12>}, {pipeline_mode = #tpu.pipeline_mode<synchronous>, transform_indices = @transform_1, window_bounds = array<i64: 12, 128>}, {pipeline_mode = #tpu.pipeline_mode<synchronous>, transform_indices = @transform_2, window_bounds = array<i64: 1, 128>}, {pipeline_mode = #tpu.pipeline_mode<synchronous>, transform_indices = @transform_3, window_bounds = array<i64: 128, 32>}, {pipeline_mode = #tpu.pipeline_mode<synchronous>, transform_indices = @transform_4, window_bounds = array<i64: 1, 32>}, {pipeline_mode = #tpu.pipeline_mode<synchronous>, transform_indices = @transform_5, window_bounds = array<i64: 9, 32, 64>}, {pipeline_mode = #tpu.pipeline_mode<synchronous>, transform_indices = @transform_6, window_bounds = array<i64: 1, 64>}, {pipeline_mode = #tpu.pipeline_mode<synchronous>, transform_indices = @transform_7, window_bounds = array<i64: 64, 1>}, {pipeline_mode = #tpu.pipeline_mode<synchronous>, transform_indices = @transform_8, window_bounds = array<i64: 1, 1>}, {pipeline_mode = #tpu.pipeline_mode<synchronous>, transform_indices = @transform_9, window_bounds = array<i64: 2, 1>}]} {
    %c0 = arith.constant 0 : index
    %c0_0 = arith.constant 0 : index
    %0 = vector.load %arg1[%c0, %c0_0] : memref<32x12xf32, #tpu.memory_space<vmem>>, vector<32x12xf32>
    %c0_1 = arith.constant 0 : index
    %c0_2 = arith.constant 0 : index
    %1 = vector.load %arg2[%c0_1, %c0_2] : memref<12x128xf32, #tpu.memory_space<vmem>>, vector<12x128xf32>
    %cst = arith.constant dense<0.000000e+00> : vector<32x128xf32>
    %2 = tpu.matmul %0, %1, %cst {dimension_numbers = #tpu.dot_dimension_numbers<[1], [0], [0], [1], [0, 0, 1, 1], [], []>} : vector<32x12xf32>, vector<12x128xf32>, vector<32x128xf32> -> vector<32x128xf32>
    %c0_3 = arith.constant 0 : index
    %c0_4 = arith.constant 0 : index
    %3 = vector.load %arg3[%c0_3, %c0_4] : memref<1x128xf32, #tpu.memory_space<vmem>>, vector<1x128xf32>
    %4 = vector.broadcast %3 : vector<1x128xf32> to vector<32x128xf32>
    %5 = arith.addf %2, %4 : vector<32x128xf32>
    %6 = arith.negf %5 : vector<32x128xf32>
    %7 = math.exp %6 : vector<32x128xf32>
    %cst_5 = arith.constant 1.000000e+00 : f32
    %8 = vector.broadcast %cst_5 : f32 to vector<32x128xf32>
    %9 = arith.addf %8, %7 : vector<32x128xf32>
    %10 = arith.divf %8, %9 : vector<32x128xf32>
    %c0_6 = arith.constant 0 : index
    %c0_7 = arith.constant 0 : index
    %11 = vector.load %arg4[%c0_6, %c0_7] : memref<128x32xf32, #tpu.memory_space<vmem>>, vector<128x32xf32>
    %cst_8 = arith.constant dense<0.000000e+00> : vector<32x32xf32>
    %12 = tpu.matmul %10, %11, %cst_8 {dimension_numbers = #tpu.dot_dimension_numbers<[1], [0], [0], [1], [0, 0, 1, 1], [], []>} : vector<32x128xf32>, vector<128x32xf32>, vector<32x32xf32> -> vector<32x32xf32>
    %c0_9 = arith.constant 0 : index
    %c0_10 = arith.constant 0 : index
    %13 = vector.load %arg5[%c0_9, %c0_10] : memref<1x32xf32, #tpu.memory_space<vmem>>, vector<1x32xf32>
    %14 = vector.broadcast %13 : vector<1x32xf32> to vector<32x32xf32>
    %15 = arith.addf %12, %14 : vector<32x32xf32>
    %16 = arith.negf %15 : vector<32x32xf32>
    %17 = math.exp %16 : vector<32x32xf32>
    %cst_11 = arith.constant 1.000000e+00 : f32
    %18 = vector.broadcast %cst_11 : f32 to vector<32x32xf32>
    %19 = arith.addf %18, %17 : vector<32x32xf32>
    %20 = arith.divf %18, %19 : vector<32x32xf32>
    %cst_12 = arith.constant 0.000000e+00 : f32
    %21 = vector.broadcast %cst_12 : f32 to vector<2x64xf32>
    %22 = vector.extract_strided_slice %20 {offsets = [0, 0], sizes = [1, 32], strides = [1, 1]} : vector<32x32xf32> to vector<1x32xf32>
    %23 = vector.extract_strided_slice %20 {offsets = [16, 0], sizes = [1, 32], strides = [1, 1]} : vector<32x32xf32> to vector<1x32xf32>
    %24 = tpu.concatenate %22, %23 in 0 : vector<1x32xf32>, vector<1x32xf32> -> vector<2x32xf32>
    %c0_13 = arith.constant 0 : index
    %c0_14 = arith.constant 0 : index
    %c0_15 = arith.constant 0 : index
    %25 = vector.load %arg6[%c0_13, %c0_14, %c0_15] : memref<9x32x64xf32, #tpu.memory_space<vmem>>, vector<1x32x64xf32>
    %26 = vector.shape_cast %25 : vector<1x32x64xf32> to vector<32x64xf32>
    %cst_16 = arith.constant dense<0.000000e+00> : vector<2x64xf32>
    %27 = tpu.matmul %24, %26, %cst_16 {dimension_numbers = #tpu.dot_dimension_numbers<[1], [0], [0], [1], [0, 0, 1, 1], [], []>} : vector<2x32xf32>, vector<32x64xf32>, vector<2x64xf32> -> vector<2x64xf32>
    %28 = arith.addf %21, %27 : vector<2x64xf32>
    %29 = vector.extract_strided_slice %20 {offsets = [1, 0], sizes = [1, 32], strides = [1, 1]} : vector<32x32xf32> to vector<1x32xf32>
    %30 = vector.extract_strided_slice %20 {offsets = [17, 0], sizes = [1, 32], strides = [1, 1]} : vector<32x32xf32> to vector<1x32xf32>
    %31 = tpu.concatenate %29, %30 in 0 : vector<1x32xf32>, vector<1x32xf32> -> vector<2x32xf32>
    %c1 = arith.constant 1 : index
    %c0_17 = arith.constant 0 : index
    %c0_18 = arith.constant 0 : index
    %32 = vector.load %arg6[%c1, %c0_17, %c0_18] : memref<9x32x64xf32, #tpu.memory_space<vmem>>, vector<1x32x64xf32>
    %33 = vector.shape_cast %32 : vector<1x32x64xf32> to vector<32x64xf32>
    %cst_19 = arith.constant dense<0.000000e+00> : vector<2x64xf32>
    %34 = tpu.matmul %31, %33, %cst_19 {dimension_numbers = #tpu.dot_dimension_numbers<[1], [0], [0], [1], [0, 0, 1, 1], [], []>} : vector<2x32xf32>, vector<32x64xf32>, vector<2x64xf32> -> vector<2x64xf32>
    %35 = arith.addf %28, %34 : vector<2x64xf32>
    %36 = vector.extract_strided_slice %20 {offsets = [2, 0], sizes = [1, 32], strides = [1, 1]} : vector<32x32xf32> to vector<1x32xf32>
    %37 = vector.extract_strided_slice %20 {offsets = [18, 0], sizes = [1, 32], strides = [1, 1]} : vector<32x32xf32> to vector<1x32xf32>
    %38 = tpu.concatenate %36, %37 in 0 : vector<1x32xf32>, vector<1x32xf32> -> vector<2x32xf32>
    %c2 = arith.constant 2 : index
    %c0_20 = arith.constant 0 : index
    %c0_21 = arith.constant 0 : index
    %39 = vector.load %arg6[%c2, %c0_20, %c0_21] : memref<9x32x64xf32, #tpu.memory_space<vmem>>, vector<1x32x64xf32>
    %40 = vector.shape_cast %39 : vector<1x32x64xf32> to vector<32x64xf32>
    %cst_22 = arith.constant dense<0.000000e+00> : vector<2x64xf32>
    %41 = tpu.matmul %38, %40, %cst_22 {dimension_numbers = #tpu.dot_dimension_numbers<[1], [0], [0], [1], [0, 0, 1, 1], [], []>} : vector<2x32xf32>, vector<32x64xf32>, vector<2x64xf32> -> vector<2x64xf32>
    %42 = arith.addf %35, %41 : vector<2x64xf32>
    %43 = vector.extract_strided_slice %20 {offsets = [4, 0], sizes = [1, 32], strides = [1, 1]} : vector<32x32xf32> to vector<1x32xf32>
    %44 = vector.extract_strided_slice %20 {offsets = [20, 0], sizes = [1, 32], strides = [1, 1]} : vector<32x32xf32> to vector<1x32xf32>
    %45 = tpu.concatenate %43, %44 in 0 : vector<1x32xf32>, vector<1x32xf32> -> vector<2x32xf32>
    %c3 = arith.constant 3 : index
    %c0_23 = arith.constant 0 : index
    %c0_24 = arith.constant 0 : index
    %46 = vector.load %arg6[%c3, %c0_23, %c0_24] : memref<9x32x64xf32, #tpu.memory_space<vmem>>, vector<1x32x64xf32>
    %47 = vector.shape_cast %46 : vector<1x32x64xf32> to vector<32x64xf32>
    %cst_25 = arith.constant dense<0.000000e+00> : vector<2x64xf32>
    %48 = tpu.matmul %45, %47, %cst_25 {dimension_numbers = #tpu.dot_dimension_numbers<[1], [0], [0], [1], [0, 0, 1, 1], [], []>} : vector<2x32xf32>, vector<32x64xf32>, vector<2x64xf32> -> vector<2x64xf32>
    %49 = arith.addf %42, %48 : vector<2x64xf32>
    %50 = vector.extract_strided_slice %20 {offsets = [5, 0], sizes = [1, 32], strides = [1, 1]} : vector<32x32xf32> to vector<1x32xf32>
    %51 = vector.extract_strided_slice %20 {offsets = [21, 0], sizes = [1, 32], strides = [1, 1]} : vector<32x32xf32> to vector<1x32xf32>
    %52 = tpu.concatenate %50, %51 in 0 : vector<1x32xf32>, vector<1x32xf32> -> vector<2x32xf32>
    %c4 = arith.constant 4 : index
    %c0_26 = arith.constant 0 : index
    %c0_27 = arith.constant 0 : index
    %53 = vector.load %arg6[%c4, %c0_26, %c0_27] : memref<9x32x64xf32, #tpu.memory_space<vmem>>, vector<1x32x64xf32>
    %54 = vector.shape_cast %53 : vector<1x32x64xf32> to vector<32x64xf32>
    %cst_28 = arith.constant dense<0.000000e+00> : vector<2x64xf32>
    %55 = tpu.matmul %52, %54, %cst_28 {dimension_numbers = #tpu.dot_dimension_numbers<[1], [0], [0], [1], [0, 0, 1, 1], [], []>} : vector<2x32xf32>, vector<32x64xf32>, vector<2x64xf32> -> vector<2x64xf32>
    %56 = arith.addf %49, %55 : vector<2x64xf32>
    %57 = vector.extract_strided_slice %20 {offsets = [6, 0], sizes = [1, 32], strides = [1, 1]} : vector<32x32xf32> to vector<1x32xf32>
    %58 = vector.extract_strided_slice %20 {offsets = [22, 0], sizes = [1, 32], strides = [1, 1]} : vector<32x32xf32> to vector<1x32xf32>
    %59 = tpu.concatenate %57, %58 in 0 : vector<1x32xf32>, vector<1x32xf32> -> vector<2x32xf32>
    %c5 = arith.constant 5 : index
    %c0_29 = arith.constant 0 : index
    %c0_30 = arith.constant 0 : index
    %60 = vector.load %arg6[%c5, %c0_29, %c0_30] : memref<9x32x64xf32, #tpu.memory_space<vmem>>, vector<1x32x64xf32>
    %61 = vector.shape_cast %60 : vector<1x32x64xf32> to vector<32x64xf32>
    %cst_31 = arith.constant dense<0.000000e+00> : vector<2x64xf32>
    %62 = tpu.matmul %59, %61, %cst_31 {dimension_numbers = #tpu.dot_dimension_numbers<[1], [0], [0], [1], [0, 0, 1, 1], [], []>} : vector<2x32xf32>, vector<32x64xf32>, vector<2x64xf32> -> vector<2x64xf32>
    %63 = arith.addf %56, %62 : vector<2x64xf32>
    %64 = vector.extract_strided_slice %20 {offsets = [8, 0], sizes = [1, 32], strides = [1, 1]} : vector<32x32xf32> to vector<1x32xf32>
    %65 = vector.extract_strided_slice %20 {offsets = [24, 0], sizes = [1, 32], strides = [1, 1]} : vector<32x32xf32> to vector<1x32xf32>
    %66 = tpu.concatenate %64, %65 in 0 : vector<1x32xf32>, vector<1x32xf32> -> vector<2x32xf32>
    %c6 = arith.constant 6 : index
    %c0_32 = arith.constant 0 : index
    %c0_33 = arith.constant 0 : index
    %67 = vector.load %arg6[%c6, %c0_32, %c0_33] : memref<9x32x64xf32, #tpu.memory_space<vmem>>, vector<1x32x64xf32>
    %68 = vector.shape_cast %67 : vector<1x32x64xf32> to vector<32x64xf32>
    %cst_34 = arith.constant dense<0.000000e+00> : vector<2x64xf32>
    %69 = tpu.matmul %66, %68, %cst_34 {dimension_numbers = #tpu.dot_dimension_numbers<[1], [0], [0], [1], [0, 0, 1, 1], [], []>} : vector<2x32xf32>, vector<32x64xf32>, vector<2x64xf32> -> vector<2x64xf32>
    %70 = arith.addf %63, %69 : vector<2x64xf32>
    %71 = vector.extract_strided_slice %20 {offsets = [9, 0], sizes = [1, 32], strides = [1, 1]} : vector<32x32xf32> to vector<1x32xf32>
    %72 = vector.extract_strided_slice %20 {offsets = [25, 0], sizes = [1, 32], strides = [1, 1]} : vector<32x32xf32> to vector<1x32xf32>
    %73 = tpu.concatenate %71, %72 in 0 : vector<1x32xf32>, vector<1x32xf32> -> vector<2x32xf32>
    %c7 = arith.constant 7 : index
    %c0_35 = arith.constant 0 : index
    %c0_36 = arith.constant 0 : index
    %74 = vector.load %arg6[%c7, %c0_35, %c0_36] : memref<9x32x64xf32, #tpu.memory_space<vmem>>, vector<1x32x64xf32>
    %75 = vector.shape_cast %74 : vector<1x32x64xf32> to vector<32x64xf32>
    %cst_37 = arith.constant dense<0.000000e+00> : vector<2x64xf32>
    %76 = tpu.matmul %73, %75, %cst_37 {dimension_numbers = #tpu.dot_dimension_numbers<[1], [0], [0], [1], [0, 0, 1, 1], [], []>} : vector<2x32xf32>, vector<32x64xf32>, vector<2x64xf32> -> vector<2x64xf32>
    %77 = arith.addf %70, %76 : vector<2x64xf32>
    %78 = vector.extract_strided_slice %20 {offsets = [10, 0], sizes = [1, 32], strides = [1, 1]} : vector<32x32xf32> to vector<1x32xf32>
    %79 = vector.extract_strided_slice %20 {offsets = [26, 0], sizes = [1, 32], strides = [1, 1]} : vector<32x32xf32> to vector<1x32xf32>
    %80 = tpu.concatenate %78, %79 in 0 : vector<1x32xf32>, vector<1x32xf32> -> vector<2x32xf32>
    %c8 = arith.constant 8 : index
    %c0_38 = arith.constant 0 : index
    %c0_39 = arith.constant 0 : index
    %81 = vector.load %arg6[%c8, %c0_38, %c0_39] : memref<9x32x64xf32, #tpu.memory_space<vmem>>, vector<1x32x64xf32>
    %82 = vector.shape_cast %81 : vector<1x32x64xf32> to vector<32x64xf32>
    %cst_40 = arith.constant dense<0.000000e+00> : vector<2x64xf32>
    %83 = tpu.matmul %80, %82, %cst_40 {dimension_numbers = #tpu.dot_dimension_numbers<[1], [0], [0], [1], [0, 0, 1, 1], [], []>} : vector<2x32xf32>, vector<32x64xf32>, vector<2x64xf32> -> vector<2x64xf32>
    %84 = arith.addf %77, %83 : vector<2x64xf32>
    %c0_41 = arith.constant 0 : index
    %c0_42 = arith.constant 0 : index
    %85 = vector.load %arg7[%c0_41, %c0_42] : memref<1x64xf32, #tpu.memory_space<vmem>>, vector<1x64xf32>
    %86 = vector.broadcast %85 : vector<1x64xf32> to vector<2x64xf32>
    %87 = arith.addf %84, %86 : vector<2x64xf32>
    %88 = arith.negf %87 : vector<2x64xf32>
    %89 = math.exp %88 : vector<2x64xf32>
    %cst_43 = arith.constant 1.000000e+00 : f32
    %90 = vector.broadcast %cst_43 : f32 to vector<2x64xf32>
    %91 = arith.addf %90, %89 : vector<2x64xf32>
    %92 = arith.divf %90, %91 : vector<2x64xf32>
    %c0_44 = arith.constant 0 : index
    %c0_45 = arith.constant 0 : index
    %93 = vector.load %arg8[%c0_44, %c0_45] : memref<64x1xf32, #tpu.memory_space<vmem>>, vector<64x1xf32>
    %cst_46 = arith.constant dense<0.000000e+00> : vector<2x1xf32>
    %94 = tpu.matmul %92, %93, %cst_46 {dimension_numbers = #tpu.dot_dimension_numbers<[1], [0], [0], [1], [0, 0, 1, 1], [], []>} : vector<2x64xf32>, vector<64x1xf32>, vector<2x1xf32> -> vector<2x1xf32>
    %c0_47 = arith.constant 0 : index
    %c0_48 = arith.constant 0 : index
    %95 = vector.load %arg9[%c0_47, %c0_48] : memref<1x1xf32, #tpu.memory_space<vmem>>, vector<1x1xf32>
    %96 = vector.broadcast %95 : vector<1x1xf32> to vector<2x1xf32>
    %97 = arith.addf %94, %96 : vector<2x1xf32>
    %98 = arith.negf %97 : vector<2x1xf32>
    %99 = math.exp %98 : vector<2x1xf32>
    %cst_49 = arith.constant 1.000000e+00 : f32
    %100 = vector.broadcast %cst_49 : f32 to vector<2x1xf32>
    %101 = arith.addf %100, %99 : vector<2x1xf32>
    %102 = arith.divf %100, %101 : vector<2x1xf32>
    %c0_50 = arith.constant 0 : index
    %c0_51 = arith.constant 0 : index
    %103 = vector.load %arg10[%c0_50, %c0_51] : memref<2x1xf32, #tpu.memory_space<vmem>>, vector<2x1xf32>
    tpu.vector_store %arg10[%c0_50, %c0_51], %102 {strides = array<i32>} : memref<2x1xf32, #tpu.memory_space<vmem>>, vector<2x1xf32>,
    return
  }
  func.func @transform_0(%arg0: i32) -> (i32, i32) {
    %c0_i32 = arith.constant 0 : i32
    %c0_i32_0 = arith.constant 0 : i32
    %c0_i32_1 = arith.constant 0 : i32
    return %c0_i32, %c0_i32_0 : i32, i32
  }
  func.func @transform_1(%arg0: i32) -> (i32, i32) {
    %c0_i32 = arith.constant 0 : i32
    %c0_i32_0 = arith.constant 0 : i32
    %c0_i32_1 = arith.constant 0 : i32
    return %c0_i32, %c0_i32_0 : i32, i32
  }
  func.func @transform_2(%arg0: i32) -> (i32, i32) {
    %c0_i32 = arith.constant 0 : i32
    %c0_i32_0 = arith.constant 0 : i32
    %c0_i32_1 = arith.constant 0 : i32
    return %c0_i32, %c0_i32_0 : i32, i32
  }
  func.func @transform_3(%arg0: i32) -> (i32, i32) {
    %c0_i32 = arith.constant 0 : i32
    %c0_i32_0 = arith.constant 0 : i32
    %c0_i32_1 = arith.constant 0 : i32
    return %c0_i32, %c0_i32_0 : i32, i32
  }
  func.func @transform_4(%arg0: i32) -> (i32, i32) {
    %c0_i32 = arith.constant 0 : i32
    %c0_i32_0 = arith.constant 0 : i32
    %c0_i32_1 = arith.constant 0 : i32
    return %c0_i32, %c0_i32_0 : i32, i32
  }
  func.func @transform_5(%arg0: i32) -> (i32, i32, i32) {
    %c0_i32 = arith.constant 0 : i32
    %c0_i32_0 = arith.constant 0 : i32
    %c0_i32_1 = arith.constant 0 : i32
    %c0_i32_2 = arith.constant 0 : i32
    return %c0_i32, %c0_i32_0, %c0_i32_1 : i32, i32, i32
  }
  func.func @transform_6(%arg0: i32) -> (i32, i32) {
    %c0_i32 = arith.constant 0 : i32
    %c0_i32_0 = arith.constant 0 : i32
    %c0_i32_1 = arith.constant 0 : i32
    return %c0_i32, %c0_i32_0 : i32, i32
  }
  func.func @transform_7(%arg0: i32) -> (i32, i32) {
    %c0_i32 = arith.constant 0 : i32
    %c0_i32_0 = arith.constant 0 : i32
    %c0_i32_1 = arith.constant 0 : i32
    return %c0_i32, %c0_i32_0 : i32, i32
  }
  func.func @transform_8(%arg0: i32) -> (i32, i32) {
    %c0_i32 = arith.constant 0 : i32
    %c0_i32_0 = arith.constant 0 : i32
    %c0_i32_1 = arith.constant 0 : i32
    return %c0_i32, %c0_i32_0 : i32, i32
  }
  func.func @transform_9(%arg0: i32) -> (i32, i32) {
    %c0_i32 = arith.constant 0 : i32
    %c0_i32_0 = arith.constant 0 : i32
    %c0_i32_1 = arith.constant 0 : i32
    return %c0_i32, %c0_i32_0 : i32, i32
  }
}

</mosaic_0001>

<bundles_post_ra>
// kernel: model_forward.1
= control target key start
LH: loop header
LB: loop body
LE: loop exit
PB: predicated region body
PF: predicated region fallthrough
CT: control target
= control target key end

     0   :  { %vm60_vm0 = vcmask 1043456   ;;  %vm47_vm1 = vcmask 97280   ;;  %vm1626_vm2 = vmmov 1   ;;  %v1627_v56 = vmov 0.0|0.0   ;;  %s1960_s1 = inlined_call_operand.vmem [shape: f32[12,128], index: 1, kind: input, shape index: {}]   ;;  %s1961_s0 = inlined_call_operand.vmem [shape: f32[32,12], index: 0, kind: input, shape index: {}]   ;;  %s1962_s3 = inlined_call_operand.vmem [shape: f32[128,32], index: 3, kind: input, shape index: {}]   ;;  %s1963_s2 = inlined_call_operand.vmem [shape: f32[1,128], index: 2, kind: input, shape index: {}]   ;;  %s1964_s5 = inlined_call_operand.vmem [shape: f32[9,32,64], index: 5, kind: input, shape index: {}]   ;;  %s1965_s4 = inlined_call_operand.vmem [shape: f32[1,32], index: 4, kind: input, shape index: {}]   ;;  %s1966_s7 = inlined_call_operand.vmem [shape: f32[64,1], index: 7, kind: input, shape index: {}]   ;;  %s1967_s8 = inlined_call_operand.<no memory space> [shape: f32[1,1], index: 8, kind: input, shape index: {}]   ;;  %s1968_s6 = inlined_call_operand.vmem [shape: f32[1,64], index: 6, kind: input, shape index: {}]   ;;  %s1969_s9 = inlined_call_operand.vmem [shape: f32[2,1], index: 9, kind: output, shape index: {}]  }
   0x1   :  { %v38_v0 = vld [vmem:[%s1960_s1] sm:$0xff]  ;;  %v39_v1 = vld [vmem:[%s1960_s1 + $0x8] sm:$0xf]  ;;  %vm1479_vm3 = vmpackc.low %vm60_vm0, %vm1626_vm2  ;;  %1516 = vmatprep.subr.bf16.mxu0 %v1627_v56  ;;  %vm1628_vm4 = vmmov 0   ;;  %vm308_vm5 = vcmask 1040384   ;;  %vm323_vm6 = vcmask 261120  }
   0x2   :  { %v1478_v2 = vpack.c.bf16 %v39_v1, %v38_v0  ;;  %v34_v3 = vld [vmem:[%s1961_s0] sm:$0xff]  ;;  %v174_v5 = vld [vmem:[%s1962_s3 + $0x8] sm:$0xff]  ;;  %v36_v8 = vld [vmem:[%s1961_s0 + $0x10] sm:$0xff]  ;;  %v1629_v0 = vmov 0.0   ;;  %vm1085_vm7 = vcmask 523264   ;;  %vm1165_vm8 = vcmask 1024  }
   0x3   :  { %1316 = vmatprep.mubr.msk.f32.mxu1 %vm47_vm1, %v34_v3  ;;  %v173_v4 = vld [vmem:[%s1962_s3] sm:$0xff]  ;;  %v35_v7 = vld [vmem:[%s1961_s0 + $0x8] sm:$0xff]  ;;  %v37_v9 = vld [vmem:[%s1961_s0 + $0x18] sm:$0xff]  ;;  %1368 = vmatprep.mubr.msk.f32.mxu0 %vm1628_vm4, %v1629_v0 }
   0x4   :  { %1480 = vmatprep.subr.msk.bf16.mxu1 %vm1479_vm3, %v1478_v2  ;;  %v1484_v6 = vpack.c.bf16 %v174_v5, %v173_v4  ;;  %v175_v10 = vld [vmem:[%s1962_s3 + $0x10] sm:$0xff]  ;;  %v176_v11 = vld [vmem:[%s1962_s3 + $0x18] sm:$0xff]  ;;  %v177_v13 = vld [vmem:[%s1962_s3 + $0x20] sm:$0xff] }
   0x5   :  { %1483 = vmatpush3.bf16.msk.msra.mxu1 %vm1479_vm3, %v1478_v2  ;;  %v1488_v12 = vpack.c.bf16 %v176_v11, %v175_v10  ;;  %v178_v14 = vld [vmem:[%s1962_s3 + $0x28] sm:$0xff]  ;;  %v179_v16 = vld [vmem:[%s1962_s3 + $0x30] sm:$0xff]  ;;  %v180_v17 = vld [vmem:[%s1962_s3 + $0x38] sm:$0xff] }
   0x6   :  { %1485 = vmatprep.subr.bf16.mxu1 %v1484_v6  ;;  %v1492_v15 = vpack.c.bf16 %v178_v14, %v177_v13  ;;  %v1496_v18 = vpack.c.bf16 %v180_v17, %v179_v16  ;;  %v181_v19 = vld [vmem:[%s1962_s3 + $0x40] sm:$0xff]  ;;  %v182_v20 = vld [vmem:[%s1962_s3 + $0x48] sm:$0xff]  ;;  %v183_v22 = vld [vmem:[%s1962_s3 + $0x50] sm:$0xff] }
   0x7   :  { %v1500_v21 = vpack.c.bf16 %v182_v20, %v181_v19  ;;  %v184_v23 = vld [vmem:[%s1962_s3 + $0x58] sm:$0xff]  ;;  %v185_v25 = vld [vmem:[%s1962_s3 + $0x60] sm:$0xff]  ;;  %v186_v26 = vld [vmem:[%s1962_s3 + $0x68] sm:$0xff] }
   0x8   :  { %1317 = vmatmul.mubr.msk.f32.vlgmr.msra.gmra.mrb[0].mxu1 %vm47_vm1, %v35_v7  ;;  %v1504_v24 = vpack.c.bf16 %v184_v23, %v183_v22  ;;  %v1508_v27 = vpack.c.bf16 %v186_v26, %v185_v25  ;;  %v187_v28 = vld [vmem:[%s1962_s3 + $0x70] sm:$0xff]  ;;  %v188_v29 = vld [vmem:[%s1962_s3 + $0x78] sm:$0xff]  ;;  %v1171_v31 = vld [vmem:[%s1963_s2] ss:$0 sm:$0xff] }
   0x9   :  { %1319 = vmatprep.mubr.msk.f32.mxu1 %vm47_vm1, %v36_v8  ;;  %1487 = vmatpush3.bf16.msra.mxu1 %v1484_v6  ;;  %v1512_v30 = vpack.c.bf16 %v188_v29, %v187_v28  ;;  %v1186_v57 = vld [vmem:[%s1964_s5 + $0x20] sm:$0xff]  ;;  %v1187_v58 = vld [vmem:[%s1964_s5 + $0x28] sm:$0xff]  ;;  %v1188_v62 = vld [vmem:[%s1964_s5 + $0x30] sm:$0xff] }
   0xa   :  { %1489 = vmatprep.subr.bf16.mxu1 %v1488_v12  ;;  %v1202_v59 = vld [vmem:[%s1964_s5 + $0x80] sm:$0xff]  ;;  %v1517_v60 = vpack.c.bf16 %v1187_v58, %v1186_v57  ;;  %v1203_v61 = vld [vmem:[%s1964_s5 + $0x88] sm:$0xff]  ;;  %v1189_v63 = vld [vmem:[%s1964_s5 + $0x38] sm:$0xff] }
   0xb   :  { %v1541_v1 = vpack.c.bf16 %v1203_v61, %v1202_v59  ;;  %v1204_v2 = vld [vmem:[%s1964_s5 + $0x90] sm:$0xff]  ;;  %v1205_v3 = vld [vmem:[%s1964_s5 + $0x98] sm:$0xff]  ;;  %v1520_v4 = vpack.c.bf16 %v1189_v63, %v1188_v62  ;;  %v1181_v6 = vld [vmem:[%s1965_s4] ss:$0 sm:$0xff] }
   0xc   :  { %1320 = vmatmul.mubr.msk.f32.gmra.mrb[2].mxu1 %vm47_vm1, %v37_v9  ;;  %1518 = vmatpush3.bf16.msra.mxu0 %v1517_v60  ;;  %v1544_v5 = vpack.c.bf16 %v1205_v3, %v1204_v2  ;;  %v311_v28 = vld [vmem:[%s1964_s5 + $0x8] sm:$0xff]  ;;  %v1212_v29 = vld [vmem:[%s1964_s5 + $0xc0] sm:$0xff] }
   0xd   :  { %1491 = vmatpush3.bf16.msra.mxu1 %v1488_v12  ;;  %1519 = vmatprep.subr.bf16.mxu0 %v1627_v56  ;;  %v1193_v2 = vld [vmem:[%s1964_s5 + $0x48] sm:$0xff] }
   0xe   :  { %1493 = vmatprep.subr.bf16.mxu1 %v1492_v15 }
  0x10   :  { %1521 = vmatpush3.bf16.msra.mxu0 %v1520_v4 }
  0x11   :  { %1495 = vmatpush3.bf16.msra.mxu1 %v1492_v15  ;;  %1522 = vmatprep.subr.bf16.mxu0 %v1627_v56 }
  0x12   :  { %1497 = vmatprep.subr.bf16.mxu1 %v1496_v18 }
  0x15   :  { %1499 = vmatpush3.bf16.msra.mxu1 %v1496_v18 }
  0x16   :  { %1501 = vmatprep.subr.bf16.mxu1 %v1500_v21 }
  0x19   :  { %1503 = vmatpush3.bf16.msra.mxu1 %v1500_v21 }
  0x1a   :  { %1505 = vmatprep.subr.bf16.mxu1 %v1504_v24 }
  0x1d   :  { %1507 = vmatpush3.bf16.msra.mxu1 %v1504_v24 }
  0x1e   :  { %1509 = vmatprep.subr.bf16.mxu1 %v1508_v27 }
  0x21   :  { %1511 = vmatpush3.bf16.msra.mxu1 %v1508_v27  ;;  %v310_v27 = vld [vmem:[%s1964_s5] sm:$0xff] }
  0x22   :  { %1513 = vmatprep.subr.bf16.mxu1 %v1512_v30 }
  0x25   :  { %1515 = vmatpush3.bf16.msra.mxu1 %v1512_v30 }
  0x26   :  { %1540 = vmatprep.subr.bf16.mxu1 %v1627_v56 }
  0xdb   :  { %v1318_v32 = vpop.f32.mrb[0].mxu1 }
  0xdc   :  { %v136_v33 = vadd.f32 %v1318_v32, %v1171_v31  ;;  %v130_v34 = vpop.f32.mrb[1].mxu1  ;;  %v312_v32 = vld [vmem:[%s1964_s5 + $0x10] sm:$0xff] }
  0xdd   :  { %v131_v35 = vadd.f32 %v1171_v31, %v130_v34 }
  0xde   :  { %v1178_v36 = vmul.f32 -1.442695, %v136_v33  ;;  %v313_v33 = vld [vmem:[%s1964_s5 + $0x18] sm:$0xff] }
  0xdf   :  { %v1177_v37 = vmul.f32 -1.442695, %v131_v35  ;;  %v1321_v38 = vpop.f32.mrb[2].mxu1  ;;  %v1523_v35 = vpack.c.bf16 %v311_v28, %v310_v27  ;;  %v1217_v28 = vld [vmem:[%s1964_s5 + $0xe0] sm:$0xff] }
  0xe0   :  { %1586 = vpow2.f32 %v1178_v36  ;;  %v146_v39 = vadd.f32 %v1321_v38, %v1171_v31  ;;  %v140_v40 = vpop.f32.mrb[3].mxu1 }
  0xe1   :  { %1588 = vpow2.f32 %v1177_v37  ;;  %v141_v41 = vadd.f32 %v1171_v31, %v140_v40  ;;  %v1213_v31 = vld [vmem:[%s1964_s5 + $0xc8] sm:$0xff]  ;;  %v1526_v37 = vpack.c.bf16 %v313_v33, %v312_v32  ;;  %v1220_v32 = vld [vmem:[%s1964_s5 + $0xf8] sm:$0xff] }
  0xe2   :  { %v1180_v42 = vmul.f32 -1.442695, %v146_v39  ;;  %v1553_v36 = vpack.c.bf16 %v1213_v31, %v1212_v29  ;;  %v1218_v29 = vld [vmem:[%s1964_s5 + $0xe8] sm:$0xff]  ;;  %v1219_v31 = vld [vmem:[%s1964_s5 + $0xf0] sm:$0xff] }
  0xe3   :  { %v1179_v43 = vmul.f32 -1.442695, %v141_v41  ;;  %v1562_v33 = vpack.c.bf16 %v1220_v32, %v1219_v31 }
  0xe4   :  { %1590 = vpow2.f32 %v1180_v42 }
  0xe5   :  { %1592 = vpow2.f32 %v1179_v43 }
  0xea   :  { %v1587_v44 = vpop.eup %1586 }
  0xeb   :  { %v1589_v45 = vpop.eup %1588  ;;  %v162_v46 = vadd.f32 1.0, %v1587_v44 }
  0xec   :  { %v161_v47 = vadd.f32 1.0, %v1589_v45 }
  0xee   :  { %v1591_v48 = vpop.eup %1590  ;;  %1594 = vrcp.f32 %v161_v47 }
  0xef   :  { %v1593_v49 = vpop.eup %1592  ;;  %1596 = vrcp.f32 %v162_v46  ;;  %v164_v50 = vadd.f32 1.0, %v1591_v48 }
  0xf0   :  { %v163_v51 = vadd.f32 1.0, %v1593_v49 }
  0xf2   :  { %1598 = vrcp.f32 %v163_v51 }
  0xf3   :  { %1600 = vrcp.f32 %v164_v50 }
  0xf8   :  { %v1595_v52 = vpop.eup %1594 }
  0xf9   :  { %v1597_v53 = vpop.eup %1596  ;;  %1354 = vmatprep.mubr.f32.mxu1 %v1595_v52 }
  0xfa   :  { %1355 = vmatmul.mubr.f32.vlgmr.msra.gmra.mrb[4].mxu1 %v1597_v53 }
  0xfb   :  { %1542 = vmatpush3.bf16.msra.mxu1 %v1541_v1  ;;  %v1192_v1 = vld [vmem:[%s1964_s5 + $0x40] sm:$0xff] }
  0xfc   :  { %v1599_v54 = vpop.eup %1598  ;;  %1543 = vmatprep.subr.bf16.mxu1 %v1627_v56 }
  0xfd   :  { %v1601_v55 = vpop.eup %1600  ;;  %1357 = vmatprep.mubr.f32.mxu1 %v1599_v54  ;;  %v1214_v54 = vld [vmem:[%s1964_s5 + $0xd0] sm:$0xff] }
  0xfe   :  { %1358 = vmatmul.mubr.f32.gmra.mrb[6].mxu1 %v1601_v55  ;;  %v1215_v55 = vld [vmem:[%s1964_s5 + $0xd8] sm:$0xff] }
  0xff   :  { %1412 = vmatprep.mubr.msk.f32.mxu1 %vm1628_vm4, %v1629_v0  ;;  %1545 = vmatpush3.bf16.msra.mxu1 %v1544_v5  ;;  %v1556_v5 = vpack.c.bf16 %v1215_v55, %v1214_v54 }
 0x100   :  { %1552 = vmatprep.subr.bf16.mxu1 %v1627_v56 }
 0x1cd   :  { %v1356_v7 = vpop.f32.mrb[4].mxu1 }
 0x1ce   :  { %v268_v8 = vadd.f32 %v1356_v7, %v1181_v6  ;;  %v262_v9 = vpop.f32.mrb[5].mxu1  ;;  %v1223_v7 = vld [vmem:[%s1964_s5 + $0x108] sm:$0xff] }
 0x1cf   :  { %v263_v10 = vadd.f32 %v1181_v6, %v262_v9  ;;  %v1194_v9 = vld [vmem:[%s1964_s5 + $0x50] sm:$0xff] }
 0x1d0   :  { %v1183_v11 = vmul.f32 -1.442695, %v268_v8  ;;  %v1529_v8 = vpack.c.bf16 %v1193_v2, %v1192_v1 }
 0x1d1   :  { %v1182_v12 = vmul.f32 -1.442695, %v263_v10  ;;  %v1359_v13 = vpop.f32.mrb[6].mxu1  ;;  %v1195_v10 = vld [vmem:[%s1964_s5 + $0x58] sm:$0xff] }
 0x1d2   :  { %1602 = vpow2.f32 %v1183_v11  ;;  %v278_v14 = vadd.f32 %v1359_v13, %v1181_v6  ;;  %v272_v15 = vpop.f32.mrb[7].mxu1  ;;  %v1225_v13 = vld [vmem:[%s1964_s5 + $0x118] sm:$0xff] }
 0x1d3   :  { %1604 = vpow2.f32 %v1182_v12  ;;  %v273_v16 = vadd.f32 %v1181_v6, %v272_v15  ;;  %v1222_v6 = vld [vmem:[%s1964_s5 + $0x100] sm:$0xff]  ;;  %v1224_v12 = vld [vmem:[%s1964_s5 + $0x110] sm:$0xff] }
 0x1d4   :  { %v1185_v17 = vmul.f32 -1.442695, %v278_v14  ;;  %v1565_v11 = vpack.c.bf16 %v1223_v7, %v1222_v6  ;;  %v1532_v14 = vpack.c.bf16 %v1195_v10, %v1194_v9  ;;  %v1197_v15 = vld [vmem:[%s1964_s5 + $0x60] sm:$0xff] }
 0x1d5   :  { %v1184_v18 = vmul.f32 -1.442695, %v273_v16  ;;  %v1198_v16 = vld [vmem:[%s1964_s5 + $0x68] sm:$0xff] }
 0x1d6   :  { %1606 = vpow2.f32 %v1185_v17  ;;  %v1568_v17 = vpack.c.bf16 %v1225_v13, %v1224_v12 }
 0x1d7   :  { %1608 = vpow2.f32 %v1184_v18  ;;  %v1535_v18 = vpack.c.bf16 %v1198_v16, %v1197_v15 }
 0x1dc   :  { %v1603_v19 = vpop.eup %1602 }
 0x1dd   :  { %v1605_v20 = vpop.eup %1604  ;;  %v294_v21 = vadd.f32 1.0, %v1603_v19  ;;  %v1199_v19 = vld [vmem:[%s1964_s5 + $0x70] sm:$0xff] }
 0x1de   :  { %v293_v22 = vadd.f32 1.0, %v1605_v20  ;;  %v1200_v20 = vld [vmem:[%s1964_s5 + $0x78] sm:$0xff] }
 0x1df   :  { %1610 = vrcp.f32 %v294_v21  ;;  %v1538_v21 = vpack.c.bf16 %v1200_v20, %v1199_v19 }
 0x1e0   :  { %v1607_v23 = vpop.eup %1606  ;;  %1612 = vrcp.f32 %v293_v22  ;;  %v1207_v22 = vld [vmem:[%s1964_s5 + $0xa0] sm:$0xff] }
 0x1e1   :  { %v1609_v24 = vpop.eup %1608  ;;  %v296_v25 = vadd.f32 1.0, %v1607_v23  ;;  %v1208_v23 = vld [vmem:[%s1964_s5 + $0xa8] sm:$0xff] }
 0x1e2   :  { %v295_v26 = vadd.f32 1.0, %v1609_v24  ;;  %v1547_v24 = vpack.c.bf16 %v1208_v23, %v1207_v22 }
 0x1e3   :  { %1614 = vrcp.f32 %v296_v25  ;;  %v1209_v25 = vld [vmem:[%s1964_s5 + $0xb0] sm:$0xff] }
 0x1e4   :  { %1616 = vrcp.f32 %v295_v26  ;;  %v1210_v26 = vld [vmem:[%s1964_s5 + $0xb8] sm:$0xff] }
 0x1e5   :  { %v1550_v27 = vpack.c.bf16 %v1210_v26, %v1209_v25 }
 0x1e9   :  { %v1611_v30 = vpop.eup %1610 }
 0x1ea   :  { %v1613_v34 = vpop.eup %1612  ;;  %v972_v38 = vrot.slane %v1611_v30, 2  ;;  %v890_v39 = vrot.slane %v1611_v30, 1 }
 0x1eb   :  { %v315_v41 = vrot.slane %v1613_v34, 1  ;;  %v638_v42 = vrot.slane %v1613_v34, 5  ;;  %v470_v43 = vrot.slane %v1613_v34, 2  ;;  %v554_v44 = vrot.slane %v1613_v34, 4 }
 0x1ec   :  { %v722_v48 = vrot.slane %v1613_v34, 6 }
 0x1ed   :  { %v1615_v40 = vpop.eup %1614 }
 0x1ee   :  { %v1617_v45 = vpop.eup %1616  ;;  %v807_v46 = vrot.slane %v1615_v40, 7  ;;  %v974_v47 = vrot.slane %v1615_v40, 1  ;;  %v1809_v49 = vsel %vm308_vm5, %v890_v39, %v1615_v40  ;;  %v1074_v39 = vld [vmem:[%s1966_s7 + $0x20] sm:$0xff]  ;;  %v1075_v40 = vld [vmem:[%s1966_s7 + $0x28] sm:$0xff] }
 0x1ef   :  { %v317_v50 = vsel %vm308_vm5, %v315_v41, %v1617_v45  ;;  %v640_v51 = vrot.slane %v1617_v45, 4  ;;  %v306_v52 = vrot.slane %v1617_v45, 7  ;;  %v472_v53 = vrot.slane %v1617_v45, 1 }
 0x1f0   :  { %1369 = vmatmul.mubr.msk.f32.vlgmr.msra.gmra.mrb[0].mxu0 %vm323_vm6, %v317_v50  ;;  %v809_v57 = vsel %vm308_vm5, %v1611_v30, %v807_v46  ;;  %v976_v58 = vsel %vm308_vm5, %v972_v38, %v974_v47  ;;  %v556_v59 = vrot.slane %v1617_v45, 3  ;;  %v724_v60 = vrot.slane %v1617_v45, 5 }
 0x1f1   :  { %1524 = vmatpush3.bf16.msra.mxu0 %v1523_v35  ;;  %v642_v61 = vsel %vm308_vm5, %v638_v42, %v640_v51  ;;  %1379 = vmatprep.mubr.msk.f32.mxu0 %vm1628_vm4, %v1629_v0  ;;  %v309_v62 = vsel %vm308_vm5, %v1613_v34, %v306_v52  ;;  %v474_v63 = vsel %vm308_vm5, %v470_v43, %v472_v53  ;;  %v1070_v34 = vld [vmem:[%s1966_s7] sm:$0xff]  ;;  %v1071_v35 = vld [vmem:[%s1966_s7 + $0x8] sm:$0xff]  ;;  %v1076_v42 = vld [vmem:[%s1966_s7 + $0x30] sm:$0xff]  ;;  %v14_v45 = vstv %s1967_s8 }
 0x1f2   :  { %1413 = vmatmul.mubr.msk.f32.vlgmr.msra.gmra.mrb[8].mxu1 %vm323_vm6, %v642_v61  ;;  %1525 = vmatprep.subr.bf16.mxu0 %v1627_v56  ;;  %v558_v3 = vsel %vm308_vm5, %v554_v44, %v556_v59  ;;  %v726_v4 = vsel %vm308_vm5, %v722_v48, %v724_v60  ;;  %v1559_v30 = vpack.c.bf16 %v1218_v29, %v1217_v28  ;;  %v1077_v43 = vld [vmem:[%s1966_s7 + $0x38] sm:$0xff] }
 0x1f3   :  { %1554 = vmatpush3.bf16.msra.mxu1 %v1553_v36  ;;  %1434 = vmatprep.mubr.msk.f32.mxu1 %vm1628_vm4, %v1629_v0  ;;  %v1571_v36 = vpack.c.bf16 %v1071_v35, %v1070_v34  ;;  %v1577_v41 = vpack.c.bf16 %v1075_v40, %v1074_v39  ;;  %v1580_v44 = vpack.c.bf16 %v1077_v43, %v1076_v42 }
 0x1f4   :  { %1555 = vmatprep.subr.bf16.mxu1 %v1627_v56  ;;  %15 = vst [vmem:[#allocation2] sm:$0x1] %v14_v45 }
 0x1f5   :  { %1527 = vmatpush3.bf16.msra.mxu0 %v1526_v37  ;;  %v1072_v37 = vld [vmem:[%s1966_s7 + $0x10] sm:$0xff] }
 0x1f6   :  { %1528 = vmatprep.subr.bf16.mxu0 %v1627_v56 }
 0x1f7   :  { %1557 = vmatpush3.bf16.msra.mxu1 %v1556_v5 }
 0x1f8   :  { %1380 = vmatmul.mubr.msk.f32.vlgmr.msra.gmra.mrb[2].mxu0 %vm323_vm6, %v309_v62  ;;  %1564 = vmatprep.subr.bf16.mxu1 %v1627_v56 }
 0x1f9   :  { %1530 = vmatpush3.bf16.msra.mxu0 %v1529_v8  ;;  %1390 = vmatprep.mubr.msk.f32.mxu0 %vm1628_vm4, %v1629_v0  ;;  %v1227_v8 = vld [vmem:[%s1968_s6] ss:$0 sm:$0xff] }
 0x1fa   :  { %1435 = vmatmul.mubr.msk.f32.vlgmr.msra.gmra.mrb[10].mxu1 %vm323_vm6, %v809_v57  ;;  %1531 = vmatprep.subr.bf16.mxu0 %v1627_v56 }
 0x1fb   :  { %1566 = vmatpush3.bf16.msra.mxu1 %v1565_v11  ;;  %1456 = vmatprep.mubr.msk.f32.mxu1 %vm1628_vm4, %v1629_v0  ;;  %v1229_v15 = vld [vmem:[#allocation2] ss:$0 sm:$0xff] }
 0x1fc   :  { %1567 = vmatprep.subr.bf16.mxu1 %v1627_v56 }
 0x1fd   :  { %1533 = vmatpush3.bf16.msra.mxu0 %v1532_v14 }
 0x1fe   :  { %1534 = vmatprep.subr.bf16.mxu0 %v1627_v56 }
 0x1ff   :  { %1569 = vmatpush3.bf16.msra.mxu1 %v1568_v17 }
 0x200   :  { %1391 = vmatmul.mubr.msk.f32.vlgmr.msra.gmra.mrb[4].mxu0 %vm323_vm6, %v474_v63 }
 0x201   :  { %1536 = vmatpush3.bf16.msra.mxu0 %v1535_v18  ;;  %1401 = vmatprep.mubr.msk.f32.mxu0 %vm1628_vm4, %v1629_v0 }
 0x202   :  { %1457 = vmatmul.mubr.msk.f32.vlgmr.msra.gmra.mrb[12].mxu1 %vm323_vm6, %v976_v58  ;;  %1537 = vmatprep.subr.bf16.mxu0 %v1627_v56 }
 0x205   :  { %1539 = vmatpush3.bf16.msra.mxu0 %v1538_v21 }
 0x206   :  { %1546 = vmatprep.subr.bf16.mxu0 %v1627_v56 }
 0x208   :  { %1402 = vmatmul.mubr.msk.f32.vlgmr.msra.gmra.mrb[6].mxu0 %vm323_vm6, %v558_v3 }
 0x209   :  { %1548 = vmatpush3.bf16.msra.mxu0 %v1547_v24  ;;  %1423 = vmatprep.mubr.msk.f32.mxu0 %vm1628_vm4, %v1629_v0 }
 0x20a   :  { %1549 = vmatprep.subr.bf16.mxu0 %v1627_v56 }
 0x20d   :  { %1551 = vmatpush3.bf16.msra.mxu0 %v1550_v27 }
 0x20e   :  { %1558 = vmatprep.subr.bf16.mxu0 %v1627_v56 }
 0x210   :  { %1424 = vmatmul.mubr.msk.f32.vlgmr.msra.gmra.mrb[8].mxu0 %vm323_vm6, %v726_v4 }
 0x211   :  { %1560 = vmatpush3.bf16.msra.mxu0 %v1559_v30  ;;  %1445 = vmatprep.mubr.msk.f32.mxu0 %vm1628_vm4, %v1629_v0 }
 0x212   :  { %1561 = vmatprep.subr.bf16.mxu0 %v1627_v56 }
 0x215   :  { %1563 = vmatpush3.bf16.msra.mxu0 %v1562_v33 }
 0x216   :  { %1570 = vmatprep.subr.bf16.mxu0 %v1627_v56 }
 0x218   :  { %1446 = vmatmul.mubr.msk.f32.vlgmr.msra.gmra.mrb[10].mxu0 %vm323_vm6, %v1809_v49 }
 0x219   :  { %1475 = vmatprep.mubr.msk.f32.mxu0 %vm1628_vm4, %v1629_v0  ;;  %1572 = vmatpush3.bf16.msra.mxu0 %v1571_v36  ;;  %v1073_v0 = vld [vmem:[%s1966_s7 + $0x18] sm:$0xff] }
 0x21a   :  { %1573 = vmatprep.subr.bf16.mxu0 %v1627_v56  ;;  %v1574_v38 = vpack.c.bf16 %v1073_v0, %v1072_v37 }
 0x21d   :  { %1575 = vmatpush3.bf16.msra.mxu0 %v1574_v38 }
 0x21e   :  { %1576 = vmatprep.subr.bf16.mxu0 %v1627_v56 }
 0x221   :  { %1578 = vmatpush3.bf16.msra.mxu0 %v1577_v41 }
 0x222   :  { %1579 = vmatprep.subr.bf16.mxu0 %v1627_v56 }
 0x225   :  { %1581 = vmatpush3.bf16.msra.mxu0 %v1580_v44 }
 0x2c3   :  { %v393_v46 = vpop.f32.mrb[0].mxu0 }
 0x2c4   :  { %v1370_v47 = vpop.f32.mrb[1].mxu0 }
 0x2c5   :  { %v717_v48 = vpop.f32.mrb[8].mxu1 }
 0x2c6   :  { %v1414_v49 = vpop.f32.mrb[9].mxu1 }
 0x2cb   :  { %v466_v50 = vpop.f32.mrb[2].mxu0 }
 0x2cc   :  { %v467_v51 = vadd.f32 %v466_v50, %v393_v46  ;;  %v1381_v52 = vpop.f32.mrb[3].mxu0 }
 0x2cd   :  { %v884_v53 = vpop.f32.mrb[10].mxu1 }
 0x2ce   :  { %v1436_v54 = vpop.f32.mrb[11].mxu1 }
 0x2d3   :  { %v549_v55 = vpop.f32.mrb[4].mxu0 }
 0x2d4   :  { %v553_v57 = vadd.f32 %v549_v55, %v467_v51  ;;  %v1392_v58 = vpop.f32.mrb[5].mxu0 }
 0x2d5   :  { %v1051_v59 = vpop.f32.mrb[12].mxu1 }
 0x2d6   :  { %v1458_v56 = vpop.f32.mrb[13].mxu1 }
 0x2db   :  { %v633_v60 = vpop.f32.mrb[6].mxu0 }
 0x2dc   :  { %v637_v61 = vadd.f32 %v633_v60, %v553_v57  ;;  %v1403_v62 = vpop.f32.mrb[7].mxu0 }
 0x2de   :  { %v721_v63 = vadd.f32 %v717_v48, %v637_v61 }
 0x2e3   :  { %v801_v1 = vpop.f32.mrb[8].mxu0 }
 0x2e4   :  { %v805_v2 = vadd.f32 %v801_v1, %v721_v63  ;;  %v1425_v3 = vpop.f32.mrb[9].mxu0 }
 0x2e6   :  { %v888_v4 = vadd.f32 %v884_v53, %v805_v2 }
 0x2eb   :  { %v967_v5 = vpop.f32.mrb[10].mxu0 }
 0x2ec   :  { %v971_v6 = vadd.f32 %v967_v5, %v888_v4  ;;  %v1447_v7 = vpop.f32.mrb[11].mxu0 }
 0x2ee   :  { %v1055_v9 = vadd.f32 %v1051_v59, %v971_v6 }
 0x2f0   :  { %v1063_v10 = vadd.f32 %v1227_v8, %v1055_v9 }
 0x2f2   :  { %v1228_v11 = vmul.f32 -1.442695, %v1063_v10 }
 0x2f4   :  { %1618 = vpow2.f32 %v1228_v11 }
 0x2fe   :  { %v1619_v12 = vpop.eup %1618 }
 0x2ff   :  { %v1067_v13 = vadd.f32 1.0, %v1619_v12 }
 0x301   :  { %1620 = vrcp.f32 %v1067_v13 }
 0x30b   :  { %v1621_v14 = vpop.eup %1620 }
 0x30c   :  { %1476 = vmatmul.mubr.msk.f32.vlgmr.msra.gmra.mrb[12].mxu0 %vm1085_vm7, %v1621_v14 }
 0x3df   :  { %v1155_v16 = vpop.f32.mrb[12].mxu0 }
 0x3e0   :  { %v1156_v17 = vadd.f32 %v1229_v15, %v1155_v16  ;;  %v1477_v18 = vpop.f32.mrb[13].mxu0 }
 0x3e2   :  { %v1231_v19 = vmul.f32 -1.442695, %v1156_v17 }
 0x3e4   :  { %1622 = vpow2.f32 %v1231_v19 }
 0x3ee   :  { %v1623_v20 = vpop.eup %1622 }
 0x3ef   :  { %v1162_v21 = vadd.f32 1.0, %v1623_v20 }
 0x3f1   :  { %1624 = vrcp.f32 %v1162_v21 }
 0x3fb   :  { %v1625_v22 = vpop.eup %1624 }
 0x3fc   :  { %1166 = vst.msk [vmem:[%s1969_s9] sm:$0x3] %vm1165_vm8, %v1625_v22 }

</bundles_post_ra>
